<compile_context>
chip_gen: v5e
topology: v5e:2x2
jax: 0.10.0
libtpu: 0.0.40
codegen_flags: <defaults>
</compile_context>

<pallas_src>
import functools

import jax
import jax.numpy as jnp
from jax import lax
from jax.experimental import pallas as pl
from jax.experimental.pallas import tpu as pltpu


def _wkld_kernel(x_ref, t_ref, p_ref, w_ref, o_ref, acc_ref):
    # x_ref, t_ref : (tile_B, tile_N)  log-probs (log_target=True), any float dtype
    # p_ref        : (tile_B, P)       peaks probability signal for this B-tile
    # w_ref        : (1, K)            dense weight lookup table
    # o_ref        : (tile_B, 1)       per-row weighted KL sums (output)
    # acc_ref      : (tile_B, 1) f32   VMEM scratch accumulator over the N axis
    n = pl.program_id(1)

    @pl.when(n == 0)
    def _():
        acc_ref[...] = jnp.zeros_like(acc_ref)

    x = x_ref[...].astype(jnp.float32)
    t = t_ref[...].astype(jnp.float32)
    # KLDivLoss(reduction='none', log_target=True): exp(target) * (target - input).
    # Zero-padded columns contribute exp(0)*(0-0) == 0, so padding is harmless.
    kl = jnp.exp(t) * (t - x)                                    # (tile_B, tile_N)
    acc_ref[...] += jnp.sum(kl, axis=1, keepdims=True)           # (tile_B, 1)

    @pl.when(n == pl.num_programs(1) - 1)
    def _():
        tb = acc_ref.shape[0]
        K = w_ref.shape[1]
        # breaths_per_window = sum(peaks, dim=1).long() (truncation toward zero)
        breaths_f = jnp.sum(p_ref[...].astype(jnp.float32), axis=1, keepdims=True)
        breaths = jnp.trunc(breaths_f).astype(jnp.int32)         # (tile_B, 1)
        # dict lookup via one-hot match against the dense table (default = 1.0)
        kiota = lax.broadcasted_iota(jnp.int32, (tb, K), 1)      # (tile_B, K)
        match = breaths == kiota                                 # (tile_B, K)
        matched_w = jnp.sum(
            jnp.where(match, w_ref[...].astype(jnp.float32), 0.0),
            axis=1, keepdims=True)                               # (tile_B, 1)
        has_match = jnp.any(match, axis=1, keepdims=True)        # (tile_B, 1)
        weight = jnp.where(has_match, matched_w, 1.0)            # (tile_B, 1)
        o_ref[...] = acc_ref[...] * weight


def _round_up(v, m):
    return ((v + m - 1) // m) * m


def _pick_tile(dim, candidates):
    for c in candidates:
        if dim % c == 0:
            return c
    return candidates[-1]


@functools.partial(jax.jit, static_argnames=())
def weighted_kl_div_loss(x, t, peaks, weight_table):
    """x, t: [B, N] log-probs (f32 or bf16); peaks: [B, P]; weight_table: [1, K]."""
    B, N = x.shape
    _, P = peaks.shape

    # Pad to tileable shapes (zero padding is exact: padded KL terms are 0, and padded
    # rows are sliced off before the mean).
    N_pad = _round_up(N, 128)
    B_pad = _round_up(B, 8)
    tile_N = _pick_tile(N_pad, (2048, 1024, 512, 256, 128))
    tile_B = _pick_tile(B_pad, (256, 128, 64, 32, 16, 8))

    if (B_pad, N_pad) != (B, N):
        x = jnp.pad(x, ((0, B_pad - B), (0, N_pad - N)))
        t = jnp.pad(t, ((0, B_pad - B), (0, N_pad - N)))
    if B_pad != B:
        peaks = jnp.pad(peaks, ((0, B_pad - B), (0, 0)))

    grid = (B_pad // tile_B, N_pad // tile_N)

    partials = pl.pallas_call(
        _wkld_kernel,
        out_shape=jax.ShapeDtypeStruct((B_pad, 1), jnp.float32),
        grid_spec=pltpu.PrefetchScalarGridSpec(
            num_scalar_prefetch=0,
            grid=grid,
            in_specs=[
                pl.BlockSpec((tile_B, tile_N), lambda b, n: (b, n)),
                pl.BlockSpec((tile_B, tile_N), lambda b, n: (b, n)),
                pl.BlockSpec((tile_B, P), lambda b, n: (b, 0)),
                pl.BlockSpec((1, weight_table.shape[1]), lambda b, n: (0, 0)),
            ],
            out_specs=pl.BlockSpec((tile_B, 1), lambda b, n: (b, 0)),
            scratch_shapes=[pltpu.VMEM((tile_B, 1), jnp.float32)],
        ),
        compiler_params=pltpu.CompilerParams(
            dimension_semantics=("parallel", "arbitrary")),
    )(x, t, peaks, weight_table)

    # torch.mean over the true batch size (drop padded rows).
    return jnp.sum(partials[:B, 0]) / B


def build_weight_table(loss_weights: dict, k_max: int) -> jnp.ndarray:
    tbl = [float(loss_weights.get(k, 1.0)) for k in range(k_max)]
    return jnp.asarray(tbl, dtype=jnp.float32).reshape(1, k_max)


def _reference(x, t, peaks, loss_weights):
    kl = jnp.exp(t.astype(jnp.float32)) * (t.astype(jnp.float32) - x.astype(jnp.float32))
    kl_per_batch = jnp.sum(kl, axis=1)
    breaths = jnp.trunc(jnp.sum(peaks, axis=1)).astype(jnp.int32)
    w = jnp.asarray([float(loss_weights.get(int(b), 1.0)) for b in breaths],
                    dtype=jnp.float32)
    return jnp.mean(kl_per_batch * w)


if __name__ == "__main__":
    loss_weights = {0: 0.5, 1: 1.5, 2: 2.0, 3: 0.75, 5: 1.25}
    K = 16
    weight_table = build_weight_table(loss_weights, K)
    key = jax.random.PRNGKey(0)

    # Case 1: nicely aligned small shapes.
    B, N, P = 8, 256, 128
    kx, kt, kp, key = (*jax.random.split(key, 3), key)
    x = jax.nn.log_softmax(jax.random.normal(kx, (B, N), dtype=jnp.float32), axis=1)
    t = jax.nn.log_softmax(jax.random.normal(kt, (B, N), dtype=jnp.float32), axis=1)
    peaks = jax.random.bernoulli(kp, 0.03, (B, P)).astype(jnp.float32)

    out = jax.block_until_ready(weighted_kl_div_loss(x, t, peaks, weight_table))
    ref = _reference(x, t, peaks, loss_weights)
    assert jnp.allclose(out, ref, rtol=1e-5, atol=1e-6), (out, ref)

    # Case 2: non-aligned shapes to exercise the padding path.
    B2, N2, P2 = 6, 200, 50
    kx2, kt2, kp2 = jax.random.split(jax.random.PRNGKey(1), 3)
    x2 = jax.nn.log_softmax(jax.random.normal(kx2, (B2, N2), dtype=jnp.float32), axis=1)
    t2 = jax.nn.log_softmax(jax.random.normal(kt2, (B2, N2), dtype=jnp.float32), axis=1)
    peaks2 = jax.random.bernoulli(kp2, 0.05, (B2, P2)).astype(jnp.float32)

    out2 = jax.block_until_ready(weighted_kl_div_loss(x2, t2, peaks2, weight_table))
    ref2 = _reference(x2, t2, peaks2, loss_weights)
    assert jnp.allclose(out2, ref2, rtol=1e-5, atol=1e-6), (out2, ref2)

    print("KERNEL_OK")
</pallas_src>

<mosaic_0001>
module attributes {stable_mosaic.version = 11 : i64} {
  func.func @_wkld_kernel(%arg0: i32, %arg1: i32, %arg2: memref<8x256xf32, #tpu.memory_space<vmem>>, %arg3: memref<8x256xf32, #tpu.memory_space<vmem>>, %arg4: memref<8x128xf32, #tpu.memory_space<vmem>>, %arg5: memref<1x16xf32, #tpu.memory_space<vmem>>, %arg6: memref<8x1xf32, #tpu.memory_space<vmem>>, %arg7: memref<8x1xf32, #tpu.memory_space<vmem>>) attributes {dimension_semantics = [#tpu.dimension_semantics<parallel>, #tpu.dimension_semantics<arbitrary>], iteration_bounds = array<i64: 1, 1>, scalar_prefetch = 0 : i64, scratch_operands = 1 : i64, tpu.core_type = #tpu.core_type<tc>, window_params = [{transform_indices = @transform_0, window_bounds = array<i64: 8, 256>}, {transform_indices = @transform_1, window_bounds = array<i64: 8, 256>}, {transform_indices = @transform_2, window_bounds = array<i64: 8, 128>}, {pipeline_mode = #tpu.pipeline_mode<synchronous>, transform_indices = @transform_3, window_bounds = array<i64: 1, 16>}, {transform_indices = @transform_4, window_bounds = array<i64: 8, 1>}]} {
    %c0_i32 = arith.constant 0 : i32
    %0 = arith.cmpi eq, %arg1, %c0_i32 : i32
    %1 = arith.extui %0 : i1 to i32
    %c0_i32_0 = arith.constant 0 : i32
    %2 = arith.cmpi ne, %1, %c0_i32_0 : i32
    scf.if %2 {
      %cst_10 = arith.constant 0.000000e+00 : f32
      %16 = vector.broadcast %cst_10 : f32 to vector<8x1xf32>
      %c0_11 = arith.constant 0 : index
      %c0_12 = arith.constant 0 : index
      %17 = vector.load %arg7[%c0_11, %c0_12] : memref<8x1xf32, #tpu.memory_space<vmem>>, vector<8x1xf32>
      tpu.vector_store %arg7[%c0_11, %c0_12], %16 {strides = array<i32>} : memref<8x1xf32, #tpu.memory_space<vmem>>, vector<8x1xf32>,
    } else {
    }
    %c0 = arith.constant 0 : index
    %c0_1 = arith.constant 0 : index
    %3 = vector.load %arg2[%c0, %c0_1] : memref<8x256xf32, #tpu.memory_space<vmem>>, vector<8x256xf32>
    %c0_2 = arith.constant 0 : index
    %c0_3 = arith.constant 0 : index
    %4 = vector.load %arg3[%c0_2, %c0_3] : memref<8x256xf32, #tpu.memory_space<vmem>>, vector<8x256xf32>
    %5 = math.exp %4 : vector<8x256xf32>
    %6 = arith.subf %4, %3 : vector<8x256xf32>
    %7 = arith.mulf %5, %6 : vector<8x256xf32>
    %c0_4 = arith.constant 0 : index
    %c0_5 = arith.constant 0 : index
    %8 = vector.load %arg7[%c0_4, %c0_5] : memref<8x1xf32, #tpu.memory_space<vmem>>, vector<8x1xf32>
    %cst = arith.constant dense<0.000000e+00> : vector<8xf32>
    %9 = vector.multi_reduction <add>, %7, %cst [1] : vector<8x256xf32> to vector<8xf32>
    %10 = vector.shape_cast %9 : vector<8xf32> to vector<8x1xf32>
    %11 = arith.addf %8, %10 : vector<8x1xf32>
    %c0_6 = arith.constant 0 : index
    %c0_7 = arith.constant 0 : index
    %12 = vector.load %arg7[%c0_6, %c0_7] : memref<8x1xf32, #tpu.memory_space<vmem>>, vector<8x1xf32>
    tpu.vector_store %arg7[%c0_6, %c0_7], %11 {strides = array<i32>} : memref<8x1xf32, #tpu.memory_space<vmem>>, vector<8x1xf32>,
    %c0_i32_8 = arith.constant 0 : i32
    %13 = arith.cmpi eq, %arg1, %c0_i32_8 : i32
    %14 = arith.extui %13 : i1 to i32
    %c0_i32_9 = arith.constant 0 : i32
    %15 = arith.cmpi ne, %14, %c0_i32_9 : i32
    scf.if %15 {
      %c0_10 = arith.constant 0 : index
      %c0_11 = arith.constant 0 : index
      %16 = vector.load %arg4[%c0_10, %c0_11] : memref<8x128xf32, #tpu.memory_space<vmem>>, vector<8x128xf32>
      %cst_12 = arith.constant dense<0.000000e+00> : vector<8xf32>
      %17 = vector.multi_reduction <add>, %16, %cst_12 [1] : vector<8x128xf32> to vector<8xf32>
      %18 = vector.shape_cast %17 : vector<8xf32> to vector<8x1xf32>
      %cst_13 = arith.constant 0.000000e+00 : f32
      %19 = vector.broadcast %cst_13 : f32 to vector<8x1xf32>
      %20 = arith.cmpf olt, %18, %19 : vector<8x1xf32>
      %21 = math.ceil %18 : vector<8x1xf32>
      %22 = math.floor %18 : vector<8x1xf32>
      %23 = arith.select %20, %21, %22 : vector<8x1xi1>, vector<8x1xf32>
      %24 = arith.fptosi %23 : vector<8x1xf32> to vector<8x1xi32>
      %25 = tpu.iota {dimensions = array<i32: 1>} : vector<8x16xi32>
      %26 = vector.broadcast %24 : vector<8x1xi32> to vector<8x16xi32>
      %27 = arith.cmpi eq, %26, %25 : vector<8x16xi32>
      %c0_14 = arith.constant 0 : index
      %c0_15 = arith.constant 0 : index
      %28 = vector.load %arg5[%c0_14, %c0_15] : memref<1x16xf32, #tpu.memory_space<vmem>>, vector<1x16xf32>
      %cst_16 = arith.constant 0.000000e+00 : f32
      %29 = vector.shape_cast %28 : vector<1x16xf32> to vector<1x16xf32>
      %30 = vector.broadcast %29 : vector<1x16xf32> to vector<8x16xf32>
      %31 = vector.broadcast %cst_16 : f32 to vector<8x16xf32>
      %32 = arith.select %27, %30, %31 : vector<8x16xi1>, vector<8x16xf32>
      %cst_17 = arith.constant dense<0.000000e+00> : vector<8xf32>
      %33 = vector.multi_reduction <add>, %32, %cst_17 [1] : vector<8x16xf32> to vector<8xf32>
      %34 = vector.shape_cast %33 : vector<8xf32> to vector<8x1xf32>
      %cst_18 = arith.constant 1.000000e+00 : f32
      %cst_19 = arith.constant 0.000000e+00 : f32
      %35 = vector.broadcast %cst_18 : f32 to vector<8x16xf32>
      %36 = vector.broadcast %cst_19 : f32 to vector<8x16xf32>
      %37 = arith.select %27, %35, %36 : vector<8x16xi1>, vector<8x16xf32>
      %cst_20 = arith.constant dense<0xFF800000> : vector<8xf32>
      %38 = vector.multi_reduction <maximumf>, %37, %cst_20 [1] : vector<8x16xf32> to vector<8xf32>
      %cst_21 = arith.constant 0.000000e+00 : f32
      %39 = vector.broadcast %cst_21 : f32 to vector<8xf32>
      %40 = arith.cmpf ogt, %38, %39 : vector<8xf32>
      %41 = vector.shape_cast %40 : vector<8xi1> to vector<8x1xi1>
      %cst_22 = arith.constant 1.000000e+00 : f32
      %42 = vector.broadcast %cst_22 : f32 to vector<8x1xf32>
      %43 = arith.select %41, %34, %42 : vector<8x1xi1>, vector<8x1xf32>
      %c0_23 = arith.constant 0 : index
      %c0_24 = arith.constant 0 : index
      %44 = vector.load %arg7[%c0_23, %c0_24] : memref<8x1xf32, #tpu.memory_space<vmem>>, vector<8x1xf32>
      %45 = arith.mulf %44, %43 : vector<8x1xf32>
      %c0_25 = arith.constant 0 : index
      %c0_26 = arith.constant 0 : index
      %46 = vector.load %arg6[%c0_25, %c0_26] : memref<8x1xf32, #tpu.memory_space<vmem>>, vector<8x1xf32>
      tpu.vector_store %arg6[%c0_25, %c0_26], %45 {strides = array<i32>} : memref<8x1xf32, #tpu.memory_space<vmem>>, vector<8x1xf32>,
    } else {
    }
    return
  }
  func.func @transform_0(%arg0: i32, %arg1: i32) -> (i32, i32) {
    %c0_i32 = arith.constant 0 : i32
    return %arg0, %arg1 : i32, i32
  }
  func.func @transform_1(%arg0: i32, %arg1: i32) -> (i32, i32) {
    %c0_i32 = arith.constant 0 : i32
    return %arg0, %arg1 : i32, i32
  }
  func.func @transform_2(%arg0: i32, %arg1: i32) -> (i32, i32) {
    %c0_i32 = arith.constant 0 : i32
    %c0_i32_0 = arith.constant 0 : i32
    return %arg0, %c0_i32 : i32, i32
  }
  func.func @transform_3(%arg0: i32, %arg1: i32) -> (i32, i32) {
    %c0_i32 = arith.constant 0 : i32
    %c0_i32_0 = arith.constant 0 : i32
    %c0_i32_1 = arith.constant 0 : i32
    return %c0_i32, %c0_i32_0 : i32, i32
  }
  func.func @transform_4(%arg0: i32, %arg1: i32) -> (i32, i32) {
    %c0_i32 = arith.constant 0 : i32
    %c0_i32_0 = arith.constant 0 : i32
    return %arg0, %c0_i32 : i32, i32
  }
}

</mosaic_0001>

<bundles_post_ra>
// kernel: weighted_kl_div_loss.1
= control target key start
LH: loop header
LB: loop body
LE: loop exit
PB: predicated region body
PF: predicated region fallthrough
CT: control target
= control target key end

     0   :  { %9 = vsyncpa [#allocation4], 0  ;;  %s255_s0 = inlined_call_operand.hbm [shape: f32[8,256], index: 0, kind: input, shape index: {}]   ;;  %s256_s1 = inlined_call_operand.hbm [shape: f32[8,256], index: 1, kind: input, shape index: {}]   ;;  %s257_s2 = inlined_call_operand.hbm [shape: f32[8,128], index: 2, kind: input, shape index: {}]   ;;  %s258_s3 = inlined_call_operand.vmem [shape: f32[1,16], index: 3, kind: input, shape index: {}]   ;;  %s259_s4 = inlined_call_operand.vmem [shape: f32[8,1], index: 4, kind: output, shape index: {}]  }
   0x1   :  { %10 = vsyncpa [#allocation6], 0  ;;  %s27_s17 = sshll.u32 %s256_s1, 4  ;;  %s208_s18 = smov [#allocation5]   ;;  %s28_s17 = int_to_ptr.hbm [resolvable:$true] %s27_s17 }
   0x2   :  { %s29_s19 = sshll.u32 %s208_s18, 4  ;;  %s16_s22 = sshll.u32 %s255_s0, 4  ;;  %s30_s19 = int_to_ptr.vmem [resolvable:$true] %s29_s19  ;;  %s17_s22 = int_to_ptr.hbm [resolvable:$true] %s16_s22 }
   0x3   :  { %32 = dma.hbm_to_vmem [thread:$0]  %s28_s17, 256, %s30_s19, [#allocation6]  }
   0x4   :  { %s209_s23 = smov [#allocation3]   ;;  %s38_s27 = sshll.u32 %s257_s2, 4  ;;  %s39_s27 = int_to_ptr.hbm [resolvable:$true] %s38_s27 }
   0x5   :  { %s18_s24 = sshll.u32 %s209_s23, 4  ;;  %s210_s1 = smov [#allocation7]   ;;  %s19_s24 = int_to_ptr.vmem [resolvable:$true] %s18_s24 }
   0x6   :  { %21 = dma.hbm_to_vmem [thread:$0]  %s17_s22, 256, %s19_s24, [#allocation4]  }
   0x7   :  { %s40_s28 = sshll.u32 %s210_s1, 4  ;;  %s41_s28 = int_to_ptr.vmem [resolvable:$true] %s40_s28 }
   0x8   :  { %43 = dma.hbm_to_vmem [thread:$0]  %s39_s27, 128, %s41_s28, [#allocation6]  }
   0x9   :  { %204 = dma.done.wait [#allocation4], 256  }
   0xa   :  { %205 = vsyncadd [#allocation4], 4294967040 }
   0xb   :  { %206 = dma.done.wait [#allocation6], 384  }
   0xc   :  { %207 = vsyncadd [#allocation6], 4294966912  ;;  %v86_v0 = vld [vmem:[#allocation7] sm:$0xff]  ;;  %v66_v1 = vld [vmem:[#allocation5] sm:$0xff]  ;;  %vm62_vm0 = vcmask 7168   ;;  %v211_v9 = vmov 0.0   ;;  %v94_v15 = vlaneseq }
   0xd   :  { %87 = vadd.xlane.f32.xlu0 %v86_v0  ;;  %v67_v2 = vld [vmem:[#allocation5 + $0x8] sm:$0xff]  ;;  %v68_v3 = vmul.f32 1.442695, %v66_v1  ;;  %v64_v5 = vld [vmem:[#allocation3] sm:$0xff]  ;;  %v65_v6 = vld [vmem:[#allocation3 + $0x8] sm:$0xff]  ;;  %63 = vst.msk [vmem:[#allocation2] sm:$0xff] %vm62_vm0, %v211_v9 }
   0xe   :  { %v70_v4 = vmul.f32 1.442695, %v67_v2  ;;  %v72_v7 = vsub.f32 %v66_v1, %v64_v5  ;;  %v73_v8 = vsub.f32 %v67_v2, %v65_v6  ;;  %v95_v19 = vand.u32 127, %v94_v15  ;;  %v127_v24 = vld [vmem:[%s258_s3] ss:$0 sm:$0xff] }
   0xf   :  { %128 = vpow2.f32 %v68_v3  ;;  %vm102_vm2 = vcmask 130048  }
  0x10   :  { %130 = vpow2.f32 %v70_v4 }
  0x14   :  { %v76_v27 = vld [vmem:[#allocation2] sm:$0xff] }
  0x15   :  { %v129_v10 = vpop.eup %128 }
  0x16   :  { %v131_v11 = vpop.eup %130  ;;  %v74_v12 = vmul.f32 %v129_v10, %v72_v7 }
  0x17   :  { %v75_v13 = vmul.f32 %v131_v11, %v73_v8 }
  0x19   :  { %v77_v14 = vadd.f32 %v75_v13, %v74_v12 }
  0x1b   :  { %78 = vadd.xlane.f32.xlu0 %v77_v14 }
  0x80   :  { %v88_v16 = vpop.xlane.xlu0 %87 }
  0x81   :  { %vm89_vm1 = vcmp.lt.f32.partialorder %v88_v16, 0.0  ;;  %v90_v17 = vceil.f32 %v88_v16  ;;  %v91_v18 = vfloor.f32 %v88_v16 }
  0x83   :  { %v92_v20 = vsel %vm89_vm1, %v90_v17, %v91_v18 }
  0x84   :  { %v122_v21 = vcvt.f32.s32 %v92_v20 }
  0x86   :  { %vm96_vm3 = vcmp.eq.s32.totalorder %v122_v21, %v95_v19 }
  0x87   :  { %v106_v22 = vsel %vm96_vm3, 1.0, %v211_v9  ;;  %v101_v25 = vsel %vm96_vm3, %v127_v24, 0.0 }
  0x88   :  { %v107_v23 = vsel %vm102_vm2, %v106_v22, -inf  ;;  %v103_v26 = vsel %vm102_vm2, %v101_v25, 0.0 }
  0x89   :  { %108 = vmax.xlane.f32.xlu1 %v107_v23 }
  0x8e   :  { %v79_v28 = vpop.xlane.xlu0 %78 }
  0x8f   :  { %v80_v29 = vadd.f32 %v79_v28, %v76_v27 }
  0x91   :  { %104 = vadd.xlane.f32.xlu1 %v103_v26  ;;  %82 = vst.msk [vmem:[#allocation2] sm:$0xff] %vm62_vm0, %v80_v29 }
  0x98   :  { %v112_v31 = vld [vmem:[#allocation2] sm:$0xff] }
  0xfc   :  { %v109_v30 = vpop.xlane.xlu1 %108 }
  0xfd   :  { %vm110_vm4 = vcmp.gt.f32.partialorder %v109_v30, 0.0 }
 0x104   :  { %v105_v32 = vpop.xlane.xlu1 %104 }
 0x105   :  { %v111_v33 = vsel %vm110_vm4, %v105_v32, 1.0 }
 0x106   :  { %v113_v34 = vmul.f32 %v112_v31, %v111_v33 }
 0x108   :  { %114 = vst.msk [vmem:[%s259_s4] sm:$0xff] %vm62_vm0, %v113_v34 }
 0x109   :  { %119 = vsyncpa [#allocation4], 1 }
 0x10a   :  { %120 = vsyncpa [#allocation6], 1 }

</bundles_post_ra>
